<compile_context>
chip_gen: v5e
topology: v5e:2x2
jax: 0.10.0
libtpu: 0.0.40
codegen_flags: <defaults>
</compile_context>

<pallas_src>
import jax
import jax.numpy as jnp
from jax.experimental import pallas as pl
from jax.experimental.pallas import tpu as pltpu


_VMEM_LIMIT_BYTES = 56 * 1024 * 1024   # stay under v7x's 64 MiB per-TC VMEM
_TILE_VMEM_BUDGET = 40 * 1024 * 1024   # budget for pipelined tiles (headroom left)


def _round_up(n, m):
    return ((n + m - 1) // m) * m


def mlp_kernel(x_ref, w1_ref, w2_ref, o_ref):
    # x_ref:  [TM, D]  f32   (batch tile of flattened inputs; cast here, on VPU)
    # w1_ref: [D,  Hp] bf16  (pre-transposed/padded at init; resident in VMEM)
    # w2_ref: [Hp, Kp] bf16  (pre-transposed/padded at init; resident in VMEM)
    # o_ref:  [TM, Kp] f32   (lane-dense: Kp % 128 == 0 -> unmasked full-lane vst)
    x = x_ref[...].astype(jnp.bfloat16)                          # in-kernel cast
    h = jnp.dot(x, w1_ref[...],
                preferred_element_type=jnp.float32)              # [TM, Hp] f32
    h = jnp.maximum(h, 0.0)                                      # ReLU in f32
    out = jnp.dot(h.astype(jnp.bfloat16), w2_ref[...],
                  preferred_element_type=jnp.float32)            # [TM, Kp] f32
    o_ref[...] = out


def prepare_weights(w1, w2, *, compute_dtype=jnp.bfloat16):
    """One-time (parameter-init) weight prep.

    w1: [hidden_dim, input_dim]  (PyTorch nn.Linear [out, in] layout)
    w2: [n_classes, hidden_dim]
    Returns:
      w1p: [D, Hp]  bf16  (transposed, hidden padded to a multiple of 128)
      w2p: [Hp, Kp] bf16  (transposed, hidden & classes padded to 128 multiples)

    Zero padding is exact: padded hidden columns of w1p give h == 0 (ReLU(0)==0)
    and padded output columns of w2p are sliced off by the forward wrapper.
    """
    H, D = w1.shape
    K, H2 = w2.shape
    assert H == H2
    Hp = _round_up(H, 128)
    Kp = _round_up(K, 128)
    w1p = jnp.pad(w1.T.astype(compute_dtype), ((0, 0), (0, Hp - H)))       # [D, Hp]
    w2p = jnp.pad(w2.T.astype(compute_dtype), ((0, Hp - H), (0, Kp - K)))  # [Hp, Kp]
    return w1p, w2p


def _choose_tm(B, D, Hp, Kp):
    """Largest batch tile (multiple of 8 sublanes) such that:
       * double-buffered x/out tiles + intermediates fit the VMEM budget
         (sized for v7x's 64 MiB/TC; plenty of slack on v5e/v6e's 128 MiB),
       * the batch grid keeps >= 2 'parallel' steps so v7x's two TensorCores
         are both fed (no effect on single-TC v5e/v6e),
       * per-grid-step overhead (~0.35 us) is amortized (cap at 2048 rows).
    """
    per_row = (2 * D * 4        # x block, f32, double-buffered
               + D * 2          # in-kernel bf16 copy of the x tile
               + Hp * (4 + 2)   # hidden h in f32 + its bf16 recast
               + 2 * Kp * 4)    # output block, f32, double-buffered
    weight_bytes = 2 * (D * Hp + Hp * Kp) * 2   # worst case: double-buffered bf16
    avail = max(_TILE_VMEM_BUDGET - weight_bytes, per_row * 8)
    tm = max(8, (avail // per_row) // 8 * 8)
    tm = min(tm, 2048)                                   # overhead already amortized
    tm = min(tm, max(8, _round_up(pl.cdiv(B, 2), 8)))    # >= 2 steps for v7x megacore
    return int(tm)


def _build_mlp_call(Bp, D, Hp, Kp, TM, cost, *, single_buffer_weights):
    # Invariant weight blocks (index_map always (0,0)) gain nothing from
    # double-buffering; request a single buffer to halve resident weight VMEM.
    w_kwargs = dict(pipeline_mode=pl.Buffered(1)) if single_buffer_weights else {}
    return pl.pallas_call(
        mlp_kernel,
        out_shape=jax.ShapeDtypeStruct((Bp, Kp), jnp.float32),
        grid=(Bp // TM,),
        in_specs=[
            pl.BlockSpec((TM, D), lambda i: (i, 0)),              # batch-tiled x (f32)
            pl.BlockSpec((D, Hp), lambda i: (0, 0), **w_kwargs),  # W1 resident
            pl.BlockSpec((Hp, Kp), lambda i: (0, 0), **w_kwargs),  # W2 resident
        ],
        out_specs=pl.BlockSpec((TM, Kp), lambda i: (i, 0)),
        compiler_params=pltpu.CompilerParams(
            dimension_semantics=("parallel",),
            vmem_limit_bytes=_VMEM_LIMIT_BYTES),
        cost_estimate=cost,
    )


def simple_model_forward(x, w1p, w2p, *, n_classes):
    """Forward pass matching SimpleModel.forward.

    x:    [B, C, H, W] float32 (any flattenable shape; only reshape applied)
    w1p:  [D, Hp]  bf16 from prepare_weights
    w2p:  [Hp, Kp] bf16 from prepare_weights
    returns [B, n_classes] float32
    """
    B = x.shape[0]
    x2d = x.reshape(B, -1)                    # == torch .view(B, -1); free, no copy
    D = x2d.shape[1]
    Dw, Hp = w1p.shape
    Hp2, Kp = w2p.shape
    assert D == Dw and Hp == Hp2 and Hp % 128 == 0 and Kp % 128 == 0
    assert n_classes <= Kp
    # D == full array dim, so a non-128-multiple D is still a legal block; padding
    # D to a 128 multiple at init would additionally avoid lane-masked loads.

    TM = _choose_tm(B, D, Hp, Kp)
    Bp = _round_up(B, TM)
    if Bp != B:
        # Only the small batch remainder is padded; x stays f32 (the bf16 cast
        # happens inside the kernel, not as a separate XLA pass over all of x).
        x2d = jnp.pad(x2d, ((0, Bp - B), (0, 0)))

    flops = 2 * Bp * D * Hp + 2 * Bp * Hp * Kp
    bytes_accessed = Bp * D * 4 + (D * Hp + Hp * Kp) * 2 + Bp * Kp * 4
    cost = pl.CostEstimate(flops=flops, transcendentals=0,
                           bytes_accessed=bytes_accessed)

    try:
        out_pad = _build_mlp_call(Bp, D, Hp, Kp, TM, cost,
                                  single_buffer_weights=True)(x2d, w1p, w2p)
    except Exception:
        # pipeline_mode=pl.Buffered(1) not supported by this JAX build: fall back
        # to default double-buffered weight blocks (identical semantics; only
        # costs ~2x the small resident weight VMEM).
        out_pad = _build_mlp_call(Bp, D, Hp, Kp, TM, cost,
                                  single_buffer_weights=False)(x2d, w1p, w2p)

    return out_pad[:B, :n_classes]


if __name__ == "__main__":
    # SimpleModel(input_dim=C*H*W, hidden_dim, n_classes)
    B, C, Hs, Ws = 2, 4, 16, 16
    input_dim = C * Hs * Ws            # 1024
    hidden_dim = 32
    n_classes = 10

    key = jax.random.PRNGKey(0)
    kx, k1, k2 = jax.random.split(key, 3)

    x = jax.random.normal(kx, (B, C, Hs, Ws), dtype=jnp.float32)
    # deterministic parameters in PyTorch Linear weight layout: [out, in]
    w1 = jax.random.normal(k1, (hidden_dim, input_dim), dtype=jnp.float32) * 0.1
    w2 = jax.random.normal(k2, (n_classes, hidden_dim), dtype=jnp.float32) * 0.1

    # one-time "parameter init" prep (transpose + pad + bf16 cast)
    w1p, w2p = prepare_weights(w1, w2)

    out = simple_model_forward(x, w1p, w2p, n_classes=n_classes)
    out = jax.block_until_ready(out)

    # reference check (plain fp32 JAX) for the same semantics;
    # bf16 operands => loosened tolerance vs the fp32 reference.
    ref = jnp.maximum(x.reshape(B, -1) @ w1.T, 0.0) @ w2.T
    assert out.shape == (B, n_classes)
    assert jnp.allclose(out, ref, atol=3e-2, rtol=3e-2), (
        float(jnp.max(jnp.abs(out - ref))))

    print("KERNEL_OK")
</pallas_src>

<mosaic_0001>
module attributes {stable_mosaic.version = 11 : i64} {
  func.func @mlp_kernel(%arg0: i32, %arg1: memref<8x1024xf32, #tpu.memory_space<vmem>>, %arg2: memref<1024x128xbf16, #tpu.memory_space<vmem>>, %arg3: memref<128x128xbf16, #tpu.memory_space<vmem>>, %arg4: memref<8x128xf32, #tpu.memory_space<vmem>>) attributes {dimension_semantics = [#tpu.dimension_semantics<parallel>], iteration_bounds = array<i64: 1>, scalar_prefetch = 0 : i64, scratch_operands = 0 : i64, tpu.core_type = #tpu.core_type<tc>, window_params = [{transform_indices = @transform_0, window_bounds = array<i64: 8, 1024>}, {pipeline_mode = #tpu.pipeline_mode<synchronous>, transform_indices = @transform_1, window_bounds = array<i64: 1024, 128>}, {pipeline_mode = #tpu.pipeline_mode<synchronous>, transform_indices = @transform_2, window_bounds = array<i64: 128, 128>}, {transform_indices = @transform_3, window_bounds = array<i64: 8, 128>}]} {
    %c0 = arith.constant 0 : index
    %c0_0 = arith.constant 0 : index
    %0 = vector.load %arg1[%c0, %c0_0] : memref<8x1024xf32, #tpu.memory_space<vmem>>, vector<8x1024xf32>
    %1 = arith.truncf %0 : vector<8x1024xf32> to vector<8x1024xbf16>
    %c0_1 = arith.constant 0 : index
    %c0_2 = arith.constant 0 : index
    %2 = vector.load %arg2[%c0_1, %c0_2] : memref<1024x128xbf16, #tpu.memory_space<vmem>>, vector<1024x128xbf16>
    %cst = arith.constant dense<0.000000e+00> : vector<8x128xf32>
    %3 = tpu.matmul %1, %2, %cst {dimension_numbers = #tpu.dot_dimension_numbers<[1], [0], [0], [1], [0, 0, 1, 1], [], []>} : vector<8x1024xbf16>, vector<1024x128xbf16>, vector<8x128xf32> -> vector<8x128xf32>
    %cst_3 = arith.constant 0.000000e+00 : f32
    %4 = vector.broadcast %cst_3 : f32 to vector<8x128xf32>
    %5 = arith.maximumf %3, %4 : vector<8x128xf32>
    %6 = arith.truncf %5 : vector<8x128xf32> to vector<8x128xbf16>
    %c0_4 = arith.constant 0 : index
    %c0_5 = arith.constant 0 : index
    %7 = vector.load %arg3[%c0_4, %c0_5] : memref<128x128xbf16, #tpu.memory_space<vmem>>, vector<128x128xbf16>
    %cst_6 = arith.constant dense<0.000000e+00> : vector<8x128xf32>
    %8 = tpu.matmul %6, %7, %cst_6 {dimension_numbers = #tpu.dot_dimension_numbers<[1], [0], [0], [1], [0, 0, 1, 1], [], []>} : vector<8x128xbf16>, vector<128x128xbf16>, vector<8x128xf32> -> vector<8x128xf32>
    %c0_7 = arith.constant 0 : index
    %c0_8 = arith.constant 0 : index
    %9 = vector.load %arg4[%c0_7, %c0_8] : memref<8x128xf32, #tpu.memory_space<vmem>>, vector<8x128xf32>
    tpu.vector_store %arg4[%c0_7, %c0_8], %8 {strides = array<i32>} : memref<8x128xf32, #tpu.memory_space<vmem>>, vector<8x128xf32>,
    return
  }
  func.func @transform_0(%arg0: i32) -> (i32, i32) {
    %c0_i32 = arith.constant 0 : i32
    %c0_i32_0 = arith.constant 0 : i32
    return %arg0, %c0_i32 : i32, i32
  }
  func.func @transform_1(%arg0: i32) -> (i32, i32) {
    %c0_i32 = arith.constant 0 : i32
    %c0_i32_0 = arith.constant 0 : i32
    %c0_i32_1 = arith.constant 0 : i32
    return %c0_i32, %c0_i32_0 : i32, i32
  }
  func.func @transform_2(%arg0: i32) -> (i32, i32) {
    %c0_i32 = arith.constant 0 : i32
    %c0_i32_0 = arith.constant 0 : i32
    %c0_i32_1 = arith.constant 0 : i32
    return %c0_i32, %c0_i32_0 : i32, i32
  }
  func.func @transform_3(%arg0: i32) -> (i32, i32) {
    %c0_i32 = arith.constant 0 : i32
    %c0_i32_0 = arith.constant 0 : i32
    return %arg0, %c0_i32 : i32, i32
  }
}

module attributes {stable_mosaic.version = 11 : i64} {
  func.func @mlp_kernel(%arg0: i32, %arg1: memref<8x1024xf32, #tpu.memory_space<vmem>>, %arg2: memref<1024x128xbf16, #tpu.memory_space<vmem>>, %arg3: memref<128x128xbf16, #tpu.memory_space<vmem>>, %arg4: memref<8x128xf32, #tpu.memory_space<vmem>>) attributes {dimension_semantics = [#tpu.dimension_semantics<parallel>], iteration_bounds = array<i64: 1>, scalar_prefetch = 0 : i64, scratch_operands = 0 : i64, tpu.core_type = #tpu.core_type<tc>, window_params = [{transform_indices = @transform_0, window_bounds = array<i64: 8, 1024>}, {pipeline_mode = #tpu.pipeline_mode<synchronous>, transform_indices = @transform_1, window_bounds = array<i64: 1024, 128>}, {pipeline_mode = #tpu.pipeline_mode<synchronous>, transform_indices = @transform_2, window_bounds = array<i64: 128, 128>}, {transform_indices = @transform_3, window_bounds = array<i64: 8, 128>}]} {
    %c0 = arith.constant 0 : index
    %c0_0 = arith.constant 0 : index
    %0 = vector.load %arg1[%c0, %c0_0] : memref<8x1024xf32, #tpu.memory_space<vmem>>, vector<8x1024xf32>
    %1 = arith.truncf %0 : vector<8x1024xf32> to vector<8x1024xbf16>
    %c0_1 = arith.constant 0 : index
    %c0_2 = arith.constant 0 : index
    %2 = vector.load %arg2[%c0_1, %c0_2] : memref<1024x128xbf16, #tpu.memory_space<vmem>>, vector<1024x128xbf16>
    %cst = arith.constant dense<0.000000e+00> : vector<8x128xf32>
    %3 = tpu.matmul %1, %2, %cst {dimension_numbers = #tpu.dot_dimension_numbers<[1], [0], [0], [1], [0, 0, 1, 1], [], []>} : vector<8x1024xbf16>, vector<1024x128xbf16>, vector<8x128xf32> -> vector<8x128xf32>
    %cst_3 = arith.constant 0.000000e+00 : f32
    %4 = vector.broadcast %cst_3 : f32 to vector<8x128xf32>
    %5 = arith.maximumf %3, %4 : vector<8x128xf32>
    %6 = arith.truncf %5 : vector<8x128xf32> to vector<8x128xbf16>
    %c0_4 = arith.constant 0 : index
    %c0_5 = arith.constant 0 : index
    %7 = vector.load %arg3[%c0_4, %c0_5] : memref<128x128xbf16, #tpu.memory_space<vmem>>, vector<128x128xbf16>
    %cst_6 = arith.constant dense<0.000000e+00> : vector<8x128xf32>
    %8 = tpu.matmul %6, %7, %cst_6 {dimension_numbers = #tpu.dot_dimension_numbers<[1], [0], [0], [1], [0, 0, 1, 1], [], []>} : vector<8x128xbf16>, vector<128x128xbf16>, vector<8x128xf32> -> vector<8x128xf32>
    %c0_7 = arith.constant 0 : index
    %c0_8 = arith.constant 0 : index
    %9 = vector.load %arg4[%c0_7, %c0_8] : memref<8x128xf32, #tpu.memory_space<vmem>>, vector<8x128xf32>
    tpu.vector_store %arg4[%c0_7, %c0_8], %8 {strides = array<i32>} : memref<8x128xf32, #tpu.memory_space<vmem>>, vector<8x128xf32>,
    return
  }
  func.func @transform_0(%arg0: i32) -> (i32, i32) {
    %c0_i32 = arith.constant 0 : i32
    %c0_i32_0 = arith.constant 0 : i32
    return %arg0, %c0_i32 : i32, i32
  }
  func.func @transform_1(%arg0: i32) -> (i32, i32) {
    %c0_i32 = arith.constant 0 : i32
    %c0_i32_0 = arith.constant 0 : i32
    %c0_i32_1 = arith.constant 0 : i32
    return %c0_i32, %c0_i32_0 : i32, i32
  }
  func.func @transform_2(%arg0: i32) -> (i32, i32) {
    %c0_i32 = arith.constant 0 : i32
    %c0_i32_0 = arith.constant 0 : i32
    %c0_i32_1 = arith.constant 0 : i32
    return %c0_i32, %c0_i32_0 : i32, i32
  }
  func.func @transform_3(%arg0: i32) -> (i32, i32) {
    %c0_i32 = arith.constant 0 : i32
    %c0_i32_0 = arith.constant 0 : i32
    return %arg0, %c0_i32 : i32, i32
  }
}

</mosaic_0001>

<bundles_post_ra>
// kernel: tpu_custom_call.1
= control target key start
LH: loop header
LB: loop body
LE: loop exit
PB: predicated region body
PF: predicated region fallthrough
CT: control target
= control target key end

     0   :  { %8 = vsyncpa [#allocation3], 0  ;;  %s1296_s0 = inlined_call_operand.hbm [shape: f32[8,1024], index: 0, kind: input, shape index: {}]   ;;  %s1297_s1 = inlined_call_operand.hbm [shape: bf16[1024,128], index: 1, kind: input, shape index: {}]   ;;  %s1298_s2 = inlined_call_operand.hbm [shape: bf16[128,128], index: 2, kind: input, shape index: {}]   ;;  %s1299_s3 = inlined_call_operand.hbm [shape: f32[8,128], index: 3, kind: output, shape index: {}]  }
   0x1   :  { %9 = vsyncpa [#allocation6], 0  ;;  %s26_s14 = sshll.u32 %s1297_s1, 4  ;;  %s27_s14 = int_to_ptr.hbm [resolvable:$true] %s26_s14 }
   0x2   :  { %10 = vsyncpa [#allocation4], 0  ;;  %s1258_s15 = smov [#allocation5]   ;;  %s16_s19 = sshll.u32 %s1296_s0, 4  ;;  %s17_s19 = int_to_ptr.hbm [resolvable:$true] %s16_s19 }
   0x3   :  { %s28_s16 = sshll.u32 %s1258_s15, 4  ;;  %s1259_s20 = smov 64   ;;  %s29_s16 = int_to_ptr.vmem [resolvable:$true] %s28_s16 }
   0x4   :  { %s1260_s21 = smov 4   ;;  %s1261_s22 = smov [#allocation2]  }
   0x5   :  { %34 = dma.hbm_to_vmem [thread:$0]  %s27_s14, 8192, %s29_s16, [#allocation6], %s1259_s20, %s1259_s20, %s1260_s21  }
   0x6   :  { %s18_s23 = sshll.u32 %s1261_s22, 4  ;;  %s39_s26 = sshll.u32 %s1298_s2, 4  ;;  %s19_s23 = int_to_ptr.vmem [resolvable:$true] %s18_s23  ;;  %s40_s26 = int_to_ptr.hbm [resolvable:$true] %s39_s26 }
   0x7   :  { %21 = dma.hbm_to_vmem [thread:$0]  %s17_s19, 1024, %s19_s23, [#allocation3]  }
   0x8   :  { %s1262_s1 = smov [#allocation7]  }
   0x9   :  { %s41_s27 = sshll.u32 %s1262_s1, 4  ;;  %s42_s27 = int_to_ptr.vmem [resolvable:$true] %s41_s27 }
   0xa   :  { %47 = dma.hbm_to_vmem [thread:$0]  %s40_s26, 1024, %s42_s27, [#allocation6], %s1259_s20, %s1259_s20, %s1260_s21  }
   0xb   :  { %1252 = dma.done.wait [#allocation3], 1024  }
   0xc   :  { %1253 = vsyncadd [#allocation3], 4294966272 }
   0xd   :  { %1254 = dma.done.wait [#allocation6], 9216  }
   0xe   :  { %1255 = vsyncadd [#allocation6], 4294958080  ;;  %v1085_v0 = vld [vmem:[#allocation5 + $0x38] sm:$0xff]  ;;  %v1084_v4 = vld [vmem:[#allocation5 + $0x30] sm:$0xff]  ;;  %s1263_s0 = smov [#allocation8]   ;;  %s779_s30 = sshll.u32 %s1299_s3, 4  ;;  %s780_s30 = int_to_ptr.hbm [resolvable:$true] %s779_s30 }
   0xf   :  { %v1093_v1 = vld [vmem:[#allocation5 + $0x78] sm:$0xff]  ;;  %588 = vmatpush.bf16.msra.mxu0 %v1085_v0  ;;  %v1092_v5 = vld [vmem:[#allocation5 + $0x70] sm:$0xff]  ;;  %v1083_v8 = vld [vmem:[#allocation5 + $0x28] sm:$0xff]  ;;  %s777_s2 = sshll.u32 %s1263_s0, 4  ;;  %s778_s2 = int_to_ptr.vmem [resolvable:$true] %s777_s2 }
  0x10   :  { %v1101_v2 = vld [vmem:[#allocation5 + $0xb8] sm:$0xff]  ;;  %601 = vmatpush.bf16.msra.mxu1 %v1093_v1  ;;  %v1100_v6 = vld [vmem:[#allocation5 + $0xb0] sm:$0xff]  ;;  %v1091_v9 = vld [vmem:[#allocation5 + $0x68] sm:$0xff] }
  0x11   :  { %v1109_v3 = vld [vmem:[#allocation5 + $0xf8] sm:$0xff]  ;;  %614 = vmatpush.bf16.msra.mxu2 %v1101_v2  ;;  %v1108_v7 = vld [vmem:[#allocation5 + $0xf0] sm:$0xff]  ;;  %v1099_v10 = vld [vmem:[#allocation5 + $0xa8] sm:$0xff] }
  0x12   :  { %627 = vmatpush.bf16.msra.mxu3 %v1109_v3  ;;  %v1107_v11 = vld [vmem:[#allocation5 + $0xe8] sm:$0xff]  ;;  %v1082_v12 = vld [vmem:[#allocation5 + $0x20] sm:$0xff]  ;;  %v1081_v16 = vld [vmem:[#allocation5 + $0x18] sm:$0xff] }
  0x13   :  { %589 = vmatpush.bf16.msra.mxu0 %v1084_v4  ;;  %v1090_v13 = vld [vmem:[#allocation5 + $0x60] sm:$0xff]  ;;  %v1089_v17 = vld [vmem:[#allocation5 + $0x58] sm:$0xff]  ;;  %v1080_v20 = vld [vmem:[#allocation5 + $0x10] sm:$0xff] }
  0x14   :  { %602 = vmatpush.bf16.msra.mxu1 %v1092_v5  ;;  %v1098_v14 = vld [vmem:[#allocation5 + $0xa0] sm:$0xff]  ;;  %v1097_v18 = vld [vmem:[#allocation5 + $0x98] sm:$0xff]  ;;  %v1088_v21 = vld [vmem:[#allocation5 + $0x50] sm:$0xff] }
  0x15   :  { %615 = vmatpush.bf16.msra.mxu2 %v1100_v6  ;;  %v1106_v15 = vld [vmem:[#allocation5 + $0xe0] sm:$0xff]  ;;  %v1105_v19 = vld [vmem:[#allocation5 + $0xd8] sm:$0xff]  ;;  %v1096_v22 = vld [vmem:[#allocation5 + $0x90] sm:$0xff] }
  0x16   :  { %628 = vmatpush.bf16.msra.mxu3 %v1108_v7  ;;  %v1104_v23 = vld [vmem:[#allocation5 + $0xd0] sm:$0xff]  ;;  %v1079_v24 = vld [vmem:[#allocation5 + $0x8] sm:$0xff]  ;;  %v1078_v28 = vld [vmem:[#allocation5] sm:$0xff] }
  0x17   :  { %590 = vmatpush.bf16.msra.mxu0 %v1083_v8  ;;  %v1087_v25 = vld [vmem:[#allocation5 + $0x48] sm:$0xff]  ;;  %v1086_v29 = vld [vmem:[#allocation5 + $0x40] sm:$0xff]  ;;  %v1117_v32 = vld [vmem:[#allocation5 + $0x138] sm:$0xff] }
  0x18   :  { %603 = vmatpush.bf16.msra.mxu1 %v1091_v9  ;;  %v1095_v26 = vld [vmem:[#allocation5 + $0x88] sm:$0xff]  ;;  %v1094_v30 = vld [vmem:[#allocation5 + $0x80] sm:$0xff]  ;;  %v62_v33 = vld [vmem:[#allocation2 + $0x10] sm:$0xff] }
  0x19   :  { %616 = vmatpush.bf16.msra.mxu2 %v1099_v10  ;;  %v1103_v27 = vld [vmem:[#allocation5 + $0xc8] sm:$0xff]  ;;  %v1102_v31 = vld [vmem:[#allocation5 + $0xc0] sm:$0xff]  ;;  %v1125_v35 = vld [vmem:[#allocation5 + $0x178] sm:$0xff]  ;;  %v70_v40 = vpack.c.bf16 %v62_v33, %v62_v33 }
  0x1a   :  { %629 = vmatpush.bf16.msra.mxu3 %v1107_v11  ;;  %v60_v34 = vld [vmem:[#allocation2] sm:$0xff]  ;;  %v63_v36 = vld [vmem:[#allocation2 + $0x18] sm:$0xff]  ;;  %v61_v37 = vld [vmem:[#allocation2 + $0x8] sm:$0xff] }
  0x1b   :  { %591 = vmatpush.bf16.msra.mxu0 %v1082_v12  ;;  %v1133_v38 = vld [vmem:[#allocation5 + $0x1b8] sm:$0xff]  ;;  %v68_v41 = vpack.c.bf16 %v60_v34, %v60_v34  ;;  %v71_v42 = vpack.c.bf16 %v63_v36, %v63_v36  ;;  %v69_v43 = vpack.c.bf16 %v61_v37, %v61_v37  ;;  %v1116_v44 = vld [vmem:[#allocation5 + $0x130] sm:$0xff]  ;;  %v1115_v48 = vld [vmem:[#allocation5 + $0x128] sm:$0xff] }
  0x1c   :  { %604 = vmatpush.bf16.msra.mxu1 %v1090_v13  ;;  %v1141_v39 = vld [vmem:[#allocation5 + $0x1f8] sm:$0xff]  ;;  %v1124_v45 = vld [vmem:[#allocation5 + $0x170] sm:$0xff]  ;;  %v1123_v49 = vld [vmem:[#allocation5 + $0x168] sm:$0xff] }
  0x1d   :  { %617 = vmatpush.bf16.msra.mxu2 %v1098_v14  ;;  %v1132_v46 = vld [vmem:[#allocation5 + $0x1b0] sm:$0xff]  ;;  %v1131_v50 = vld [vmem:[#allocation5 + $0x1a8] sm:$0xff]  ;;  %v1114_v52 = vld [vmem:[#allocation5 + $0x120] sm:$0xff] }
  0x1e   :  { %630 = vmatpush.bf16.msra.mxu3 %v1106_v15  ;;  %v1140_v47 = vld [vmem:[#allocation5 + $0x1f0] sm:$0xff]  ;;  %v1139_v51 = vld [vmem:[#allocation5 + $0x1e8] sm:$0xff]  ;;  %v1122_v53 = vld [vmem:[#allocation5 + $0x160] sm:$0xff] }
  0x1f   :  { %592 = vmatpush.bf16.msra.mxu0 %v1081_v16  ;;  %v1130_v54 = vld [vmem:[#allocation5 + $0x1a0] sm:$0xff]  ;;  %v1113_v56 = vld [vmem:[#allocation5 + $0x118] sm:$0xff]  ;;  %v1112_v60 = vld [vmem:[#allocation5 + $0x110] sm:$0xff] }
  0x20   :  { %605 = vmatpush.bf16.msra.mxu1 %v1089_v17  ;;  %v1138_v55 = vld [vmem:[#allocation5 + $0x1e0] sm:$0xff]  ;;  %v1121_v57 = vld [vmem:[#allocation5 + $0x158] sm:$0xff]  ;;  %v1120_v61 = vld [vmem:[#allocation5 + $0x150] sm:$0xff] }
  0x21   :  { %618 = vmatpush.bf16.msra.mxu2 %v1097_v18  ;;  %v1129_v58 = vld [vmem:[#allocation5 + $0x198] sm:$0xff]  ;;  %v1128_v62 = vld [vmem:[#allocation5 + $0x190] sm:$0xff]  ;;  %v1111_v0 = vld [vmem:[#allocation5 + $0x108] sm:$0xff] }
  0x22   :  { %631 = vmatpush.bf16.msra.mxu3 %v1105_v19  ;;  %v1137_v59 = vld [vmem:[#allocation5 + $0x1d8] sm:$0xff]  ;;  %v1136_v63 = vld [vmem:[#allocation5 + $0x1d0] sm:$0xff]  ;;  %v1119_v1 = vld [vmem:[#allocation5 + $0x148] sm:$0xff] }
  0x23   :  { %593 = vmatpush.bf16.msra.mxu0 %v1080_v20  ;;  %v1127_v2 = vld [vmem:[#allocation5 + $0x188] sm:$0xff]  ;;  %v1110_v4 = vld [vmem:[#allocation5 + $0x100] sm:$0xff]  ;;  %v66_v10 = vld [vmem:[#allocation2 + $0x30] sm:$0xff] }
  0x24   :  { %606 = vmatpush.bf16.msra.mxu1 %v1088_v21  ;;  %v1135_v3 = vld [vmem:[#allocation5 + $0x1c8] sm:$0xff]  ;;  %v1118_v5 = vld [vmem:[#allocation5 + $0x140] sm:$0xff]  ;;  %v67_v11 = vld [vmem:[#allocation2 + $0x38] sm:$0xff]  ;;  %v74_v14 = vpack.c.bf16 %v66_v10, %v66_v10 }
  0x25   :  { %619 = vmatpush.bf16.msra.mxu2 %v1096_v22  ;;  %v1126_v6 = vld [vmem:[#allocation5 + $0x180] sm:$0xff]  ;;  %v65_v8 = vld [vmem:[#allocation2 + $0x28] sm:$0xff]  ;;  %v75_v15 = vpack.c.bf16 %v67_v11, %v67_v11  ;;  %v1149_v16 = vld [vmem:[#allocation7 + $0x38] sm:$0xff] }
  0x26   :  { %632 = vmatpush.bf16.msra.mxu3 %v1104_v23  ;;  %v64_v7 = vld [vmem:[#allocation2 + $0x20] sm:$0xff]  ;;  %v73_v13 = vpack.c.bf16 %v65_v8, %v65_v8  ;;  %v1148_v17 = vld [vmem:[#allocation7 + $0x30] sm:$0xff]  ;;  %v1147_v18 = vld [vmem:[#allocation7 + $0x28] sm:$0xff] }
  0x27   :  { %594 = vmatpush.bf16.msra.mxu0 %v1079_v24  ;;  %v1134_v9 = vld [vmem:[#allocation5 + $0x1c0] sm:$0xff]  ;;  %v72_v12 = vpack.c.bf16 %v64_v7, %v64_v7  ;;  %v1145_v20 = vld [vmem:[#allocation7 + $0x18] sm:$0xff]  ;;  %v1144_v22 = vld [vmem:[#allocation7 + $0x10] sm:$0xff] }
  0x28   :  { %607 = vmatpush.bf16.msra.mxu1 %v1087_v25  ;;  %v1146_v19 = vld [vmem:[#allocation7 + $0x20] sm:$0xff]  ;;  %v1143_v24 = vld [vmem:[#allocation7 + $0x8] sm:$0xff] }
  0x29   :  { %620 = vmatpush.bf16.msra.mxu2 %v1095_v26 }
  0x2a   :  { %633 = vmatpush.bf16.msra.mxu3 %v1103_v27 }
  0x2b   :  { %595 = vmatpush.bf16.msra.mxu0 %v1078_v28  ;;  %v1142_v28 = vld [vmem:[#allocation7] sm:$0xff] }
  0x2c   :  { %608 = vmatpush.bf16.msra.mxu1 %v1086_v29 }
  0x2d   :  { %621 = vmatpush.bf16.msra.mxu2 %v1094_v30 }
  0x2e   :  { %634 = vmatpush.bf16.msra.mxu3 %v1102_v31  ;;  %596 = vmatmul.bf16.vlgmr.msra.gmra.mxu0 %v68_v41 }
  0x2f   :  { %640 = vmatpush.bf16.msrb.mxu0 %v1117_v32  ;;  %609 = vmatmul.bf16.vlgmr.msra.gmra.mxu1 %v69_v43 }
  0x30   :  { %653 = vmatpush.bf16.msrb.mxu1 %v1125_v35  ;;  %622 = vmatmul.bf16.vlgmr.msra.gmra.mxu2 %v70_v40 }
  0x31   :  { %666 = vmatpush.bf16.msrb.mxu2 %v1133_v38  ;;  %635 = vmatmul.bf16.vlgmr.msra.gmra.mxu3 %v71_v42 }
  0x32   :  { %679 = vmatpush.bf16.msrb.mxu3 %v1141_v39 }
  0x33   :  { %641 = vmatpush.bf16.msrb.mxu0 %v1116_v44 }
  0x34   :  { %654 = vmatpush.bf16.msrb.mxu1 %v1124_v45 }
  0x35   :  { %667 = vmatpush.bf16.msrb.mxu2 %v1132_v46 }
  0x36   :  { %680 = vmatpush.bf16.msrb.mxu3 %v1140_v47 }
  0x37   :  { %642 = vmatpush.bf16.msrb.mxu0 %v1115_v48 }
  0x38   :  { %655 = vmatpush.bf16.msrb.mxu1 %v1123_v49 }
  0x39   :  { %668 = vmatpush.bf16.msrb.mxu2 %v1131_v50 }
  0x3a   :  { %681 = vmatpush.bf16.msrb.mxu3 %v1139_v51 }
  0x3b   :  { %643 = vmatpush.bf16.msrb.mxu0 %v1114_v52 }
  0x3c   :  { %656 = vmatpush.bf16.msrb.mxu1 %v1122_v53 }
  0x3d   :  { %669 = vmatpush.bf16.msrb.mxu2 %v1130_v54 }
  0x3e   :  { %682 = vmatpush.bf16.msrb.mxu3 %v1138_v55 }
  0x3f   :  { %644 = vmatpush.bf16.msrb.mxu0 %v1113_v56 }
  0x40   :  { %657 = vmatpush.bf16.msrb.mxu1 %v1121_v57 }
  0x41   :  { %670 = vmatpush.bf16.msrb.mxu2 %v1129_v58 }
  0x42   :  { %683 = vmatpush.bf16.msrb.mxu3 %v1137_v59 }
  0x43   :  { %645 = vmatpush.bf16.msrb.mxu0 %v1112_v60 }
  0x44   :  { %658 = vmatpush.bf16.msrb.mxu1 %v1120_v61 }
  0x45   :  { %671 = vmatpush.bf16.msrb.mxu2 %v1128_v62 }
  0x46   :  { %684 = vmatpush.bf16.msrb.mxu3 %v1136_v63 }
  0x47   :  { %646 = vmatpush.bf16.msrb.mxu0 %v1111_v0 }
  0x48   :  { %659 = vmatpush.bf16.msrb.mxu1 %v1119_v1 }
  0x49   :  { %672 = vmatpush.bf16.msrb.mxu2 %v1127_v2 }
  0x4a   :  { %685 = vmatpush.bf16.msrb.mxu3 %v1135_v3 }
  0x4b   :  { %647 = vmatpush.bf16.msrb.mxu0 %v1110_v4 }
  0x4c   :  { %660 = vmatpush.bf16.msrb.mxu1 %v1118_v5 }
  0x4d   :  { %673 = vmatpush.bf16.msrb.mxu2 %v1126_v6 }
  0x4e   :  { %686 = vmatpush.bf16.msrb.mxu3 %v1134_v9  ;;  %648 = vmatmul.bf16.vlgmr.msrb.gmra.mxu0 %v72_v12 }
  0x4f   :  { %661 = vmatmul.bf16.vlgmr.msrb.gmra.mxu1 %v73_v13  ;;  %758 = vmatpush.bf16.msra.mxu0 %v1149_v16 }
  0x50   :  { %674 = vmatmul.bf16.vlgmr.msrb.gmra.mxu2 %v74_v14 }
  0x51   :  { %687 = vmatmul.bf16.vlgmr.msrb.gmra.mxu3 %v75_v15 }
  0x53   :  { %759 = vmatpush.bf16.msra.mxu0 %v1148_v17 }
  0x57   :  { %760 = vmatpush.bf16.msra.mxu0 %v1147_v18 }
  0x5b   :  { %761 = vmatpush.bf16.msra.mxu0 %v1146_v19 }
  0x5f   :  { %762 = vmatpush.bf16.msra.mxu0 %v1145_v20 }
  0x63   :  { %763 = vmatpush.bf16.msra.mxu0 %v1144_v22 }
  0x67   :  { %764 = vmatpush.bf16.msra.mxu0 %v1143_v24 }
  0x6b   :  { %765 = vmatpush.bf16.msra.mxu0 %v1142_v28 }
  0xab   :  { %v597_v21 = vpop.f32.mrf.mxu0 }
  0xac   :  { %v610_v23 = vpop.f32.mrf.mxu1 }
  0xad   :  { %v611_v32 = vadd.f32 %v610_v23, %v597_v21 }
  0xb3   :  { %v623_v25 = vpop.f32.mrf.mxu2  ;;  %v599_v27 = vpop.f32.mrf.mxu0 }
  0xb4   :  { %v636_v26 = vpop.f32.mrf.mxu3  ;;  %v612_v29 = vpop.f32.mrf.mxu1  ;;  %v624_v33 = vadd.f32 %v623_v25, %v611_v32 }
  0xb6   :  { %v637_v34 = vadd.f32 %v636_v26, %v624_v33 }
  0xbb   :  { %v625_v30 = vpop.f32.mrf.mxu2 }
  0xbc   :  { %v638_v31 = vpop.f32.mrf.mxu3 }
  0xcb   :  { %v649_v35 = vpop.f32.mrf.mxu0 }
  0xcc   :  { %v662_v36 = vpop.f32.mrf.mxu1  ;;  %v650_v37 = vadd.f32 %v649_v35, %v637_v34 }
  0xce   :  { %v663_v38 = vadd.f32 %v662_v36, %v650_v37 }
  0xd3   :  { %v675_v39 = vpop.f32.mrf.mxu2  ;;  %v651_v42 = vpop.f32.mrf.mxu0 }
  0xd4   :  { %v688_v40 = vpop.f32.mrf.mxu3  ;;  %v676_v41 = vadd.f32 %v675_v39, %v663_v38  ;;  %v664_v43 = vpop.f32.mrf.mxu1 }
  0xd6   :  { %v689_v44 = vadd.f32 %v688_v40, %v676_v41 }
  0xd8   :  { %v692_v45 = vmax.f32 %v689_v44, 0.0 }
  0xda   :  { %v693_v46 = vpack.c.bf16 %v692_v45, %v692_v45 }
  0xdb   :  { %v677_v47 = vpop.f32.mrf.mxu2 }
  0xdc   :  { %v690_v48 = vpop.f32.mrf.mxu3  ;;  %766 = vmatmul.bf16.vlgmr.msra.gmra.mxu0 %v693_v46 }
 0x159   :  { %v767_v49 = vpop.f32.mrf.mxu0 }
 0x15a   :  { %771 = vst [vmem:[#allocation8] sm:$0xff] %v767_v49 }
 0x15b   :  { %782 = dma.vmem_to_hbm [thread:$0]  %s778_s2, 128, %s780_s30, [#allocation4]  }
 0x161   :  { %v769_v50 = vpop.f32.mrf.mxu0 }
 0x162   :  { %1256 = dma.done.wait [#allocation4], 128  }
 0x163   :  { %1257 = vsyncadd [#allocation4], 4294967168 }
 0x164   :  { %787 = vsyncpa [#allocation3], 1 }
 0x165   :  { %788 = vsyncpa [#allocation6], 1 }
 0x166   :  { %789 = vsyncpa [#allocation4], 1 }

// kernel: tpu_custom_call.1
= control target key start
LH: loop header
LB: loop body
LE: loop exit
PB: predicated region body
PF: predicated region fallthrough
CT: control target
= control target key end

     0   :  { %8 = vsyncpa [#allocation3], 0  ;;  %s1296_s0 = inlined_call_operand.hbm [shape: f32[8,1024], index: 0, kind: input, shape index: {}]   ;;  %s1297_s1 = inlined_call_operand.hbm [shape: bf16[1024,128], index: 1, kind: input, shape index: {}]   ;;  %s1298_s2 = inlined_call_operand.hbm [shape: bf16[128,128], index: 2, kind: input, shape index: {}]   ;;  %s1299_s3 = inlined_call_operand.hbm [shape: f32[8,128], index: 3, kind: output, shape index: {}]  }
   0x1   :  { %9 = vsyncpa [#allocation6], 0  ;;  %s26_s14 = sshll.u32 %s1297_s1, 4  ;;  %s27_s14 = int_to_ptr.hbm [resolvable:$true] %s26_s14 }
   0x2   :  { %10 = vsyncpa [#allocation4], 0  ;;  %s1258_s15 = smov [#allocation5]   ;;  %s16_s19 = sshll.u32 %s1296_s0, 4  ;;  %s17_s19 = int_to_ptr.hbm [resolvable:$true] %s16_s19 }
   0x3   :  { %s28_s16 = sshll.u32 %s1258_s15, 4  ;;  %s1259_s20 = smov 64   ;;  %s29_s16 = int_to_ptr.vmem [resolvable:$true] %s28_s16 }
   0x4   :  { %s1260_s21 = smov 4   ;;  %s1261_s22 = smov [#allocation2]  }
   0x5   :  { %34 = dma.hbm_to_vmem [thread:$0]  %s27_s14, 8192, %s29_s16, [#allocation6], %s1259_s20, %s1259_s20, %s1260_s21  }
   0x6   :  { %s18_s23 = sshll.u32 %s1261_s22, 4  ;;  %s39_s26 = sshll.u32 %s1298_s2, 4  ;;  %s19_s23 = int_to_ptr.vmem [resolvable:$true] %s18_s23  ;;  %s40_s26 = int_to_ptr.hbm [resolvable:$true] %s39_s26 }
   0x7   :  { %21 = dma.hbm_to_vmem [thread:$0]  %s17_s19, 1024, %s19_s23, [#allocation3]  }
   0x8   :  { %s1262_s1 = smov [#allocation7]  }
   0x9   :  { %s41_s27 = sshll.u32 %s1262_s1, 4  ;;  %s42_s27 = int_to_ptr.vmem [resolvable:$true] %s41_s27 }
   0xa   :  { %47 = dma.hbm_to_vmem [thread:$0]  %s40_s26, 1024, %s42_s27, [#allocation6], %s1259_s20, %s1259_s20, %s1260_s21  }
   0xb   :  { %1252 = dma.done.wait [#allocation3], 1024  }
   0xc   :  { %1253 = vsyncadd [#allocation3], 4294966272 }
   0xd   :  { %1254 = dma.done.wait [#allocation6], 9216  }
   0xe   :  { %1255 = vsyncadd [#allocation6], 4294958080  ;;  %v1085_v0 = vld [vmem:[#allocation5 + $0x38] sm:$0xff]  ;;  %v1084_v4 = vld [vmem:[#allocation5 + $0x30] sm:$0xff]  ;;  %s1263_s0 = smov [#allocation8]   ;;  %s779_s30 = sshll.u32 %s1299_s3, 4  ;;  %s780_s30 = int_to_ptr.hbm [resolvable:$true] %s779_s30 }
   0xf   :  { %v1093_v1 = vld [vmem:[#allocation5 + $0x78] sm:$0xff]  ;;  %588 = vmatpush.bf16.msra.mxu0 %v1085_v0  ;;  %v1092_v5 = vld [vmem:[#allocation5 + $0x70] sm:$0xff]  ;;  %v1083_v8 = vld [vmem:[#allocation5 + $0x28] sm:$0xff]  ;;  %s777_s2 = sshll.u32 %s1263_s0, 4  ;;  %s778_s2 = int_to_ptr.vmem [resolvable:$true] %s777_s2 }
  0x10   :  { %v1101_v2 = vld [vmem:[#allocation5 + $0xb8] sm:$0xff]  ;;  %601 = vmatpush.bf16.msra.mxu1 %v1093_v1  ;;  %v1100_v6 = vld [vmem:[#allocation5 + $0xb0] sm:$0xff]  ;;  %v1091_v9 = vld [vmem:[#allocation5 + $0x68] sm:$0xff] }
  0x11   :  { %v1109_v3 = vld [vmem:[#allocation5 + $0xf8] sm:$0xff]  ;;  %614 = vmatpush.bf16.msra.mxu2 %v1101_v2  ;;  %v1108_v7 = vld [vmem:[#allocation5 + $0xf0] sm:$0xff]  ;;  %v1099_v10 = vld [vmem:[#allocation5 + $0xa8] sm:$0xff] }
  0x12   :  { %627 = vmatpush.bf16.msra.mxu3 %v1109_v3  ;;  %v1107_v11 = vld [vmem:[#allocation5 + $0xe8] sm:$0xff]  ;;  %v1082_v12 = vld [vmem:[#allocation5 + $0x20] sm:$0xff]  ;;  %v1081_v16 = vld [vmem:[#allocation5 + $0x18] sm:$0xff] }
  0x13   :  { %589 = vmatpush.bf16.msra.mxu0 %v1084_v4  ;;  %v1090_v13 = vld [vmem:[#allocation5 + $0x60] sm:$0xff]  ;;  %v1089_v17 = vld [vmem:[#allocation5 + $0x58] sm:$0xff]  ;;  %v1080_v20 = vld [vmem:[#allocation5 + $0x10] sm:$0xff] }
  0x14   :  { %602 = vmatpush.bf16.msra.mxu1 %v1092_v5  ;;  %v1098_v14 = vld [vmem:[#allocation5 + $0xa0] sm:$0xff]  ;;  %v1097_v18 = vld [vmem:[#allocation5 + $0x98] sm:$0xff]  ;;  %v1088_v21 = vld [vmem:[#allocation5 + $0x50] sm:$0xff] }
  0x15   :  { %615 = vmatpush.bf16.msra.mxu2 %v1100_v6  ;;  %v1106_v15 = vld [vmem:[#allocation5 + $0xe0] sm:$0xff]  ;;  %v1105_v19 = vld [vmem:[#allocation5 + $0xd8] sm:$0xff]  ;;  %v1096_v22 = vld [vmem:[#allocation5 + $0x90] sm:$0xff] }
  0x16   :  { %628 = vmatpush.bf16.msra.mxu3 %v1108_v7  ;;  %v1104_v23 = vld [vmem:[#allocation5 + $0xd0] sm:$0xff]  ;;  %v1079_v24 = vld [vmem:[#allocation5 + $0x8] sm:$0xff]  ;;  %v1078_v28 = vld [vmem:[#allocation5] sm:$0xff] }
  0x17   :  { %590 = vmatpush.bf16.msra.mxu0 %v1083_v8  ;;  %v1087_v25 = vld [vmem:[#allocation5 + $0x48] sm:$0xff]  ;;  %v1086_v29 = vld [vmem:[#allocation5 + $0x40] sm:$0xff]  ;;  %v1117_v32 = vld [vmem:[#allocation5 + $0x138] sm:$0xff] }
  0x18   :  { %603 = vmatpush.bf16.msra.mxu1 %v1091_v9  ;;  %v1095_v26 = vld [vmem:[#allocation5 + $0x88] sm:$0xff]  ;;  %v1094_v30 = vld [vmem:[#allocation5 + $0x80] sm:$0xff]  ;;  %v62_v33 = vld [vmem:[#allocation2 + $0x10] sm:$0xff] }
  0x19   :  { %616 = vmatpush.bf16.msra.mxu2 %v1099_v10  ;;  %v1103_v27 = vld [vmem:[#allocation5 + $0xc8] sm:$0xff]  ;;  %v1102_v31 = vld [vmem:[#allocation5 + $0xc0] sm:$0xff]  ;;  %v1125_v35 = vld [vmem:[#allocation5 + $0x178] sm:$0xff]  ;;  %v70_v40 = vpack.c.bf16 %v62_v33, %v62_v33 }
  0x1a   :  { %629 = vmatpush.bf16.msra.mxu3 %v1107_v11  ;;  %v60_v34 = vld [vmem:[#allocation2] sm:$0xff]  ;;  %v63_v36 = vld [vmem:[#allocation2 + $0x18] sm:$0xff]  ;;  %v61_v37 = vld [vmem:[#allocation2 + $0x8] sm:$0xff] }
  0x1b   :  { %591 = vmatpush.bf16.msra.mxu0 %v1082_v12  ;;  %v1133_v38 = vld [vmem:[#allocation5 + $0x1b8] sm:$0xff]  ;;  %v68_v41 = vpack.c.bf16 %v60_v34, %v60_v34  ;;  %v71_v42 = vpack.c.bf16 %v63_v36, %v63_v36  ;;  %v69_v43 = vpack.c.bf16 %v61_v37, %v61_v37  ;;  %v1116_v44 = vld [vmem:[#allocation5 + $0x130] sm:$0xff]  ;;  %v1115_v48 = vld [vmem:[#allocation5 + $0x128] sm:$0xff] }
  0x1c   :  { %604 = vmatpush.bf16.msra.mxu1 %v1090_v13  ;;  %v1141_v39 = vld [vmem:[#allocation5 + $0x1f8] sm:$0xff]  ;;  %v1124_v45 = vld [vmem:[#allocation5 + $0x170] sm:$0xff]  ;;  %v1123_v49 = vld [vmem:[#allocation5 + $0x168] sm:$0xff] }
  0x1d   :  { %617 = vmatpush.bf16.msra.mxu2 %v1098_v14  ;;  %v1132_v46 = vld [vmem:[#allocation5 + $0x1b0] sm:$0xff]  ;;  %v1131_v50 = vld [vmem:[#allocation5 + $0x1a8] sm:$0xff]  ;;  %v1114_v52 = vld [vmem:[#allocation5 + $0x120] sm:$0xff] }
  0x1e   :  { %630 = vmatpush.bf16.msra.mxu3 %v1106_v15  ;;  %v1140_v47 = vld [vmem:[#allocation5 + $0x1f0] sm:$0xff]  ;;  %v1139_v51 = vld [vmem:[#allocation5 + $0x1e8] sm:$0xff]  ;;  %v1122_v53 = vld [vmem:[#allocation5 + $0x160] sm:$0xff] }
  0x1f   :  { %592 = vmatpush.bf16.msra.mxu0 %v1081_v16  ;;  %v1130_v54 = vld [vmem:[#allocation5 + $0x1a0] sm:$0xff]  ;;  %v1113_v56 = vld [vmem:[#allocation5 + $0x118] sm:$0xff]  ;;  %v1112_v60 = vld [vmem:[#allocation5 + $0x110] sm:$0xff] }
  0x20   :  { %605 = vmatpush.bf16.msra.mxu1 %v1089_v17  ;;  %v1138_v55 = vld [vmem:[#allocation5 + $0x1e0] sm:$0xff]  ;;  %v1121_v57 = vld [vmem:[#allocation5 + $0x158] sm:$0xff]  ;;  %v1120_v61 = vld [vmem:[#allocation5 + $0x150] sm:$0xff] }
  0x21   :  { %618 = vmatpush.bf16.msra.mxu2 %v1097_v18  ;;  %v1129_v58 = vld [vmem:[#allocation5 + $0x198] sm:$0xff]  ;;  %v1128_v62 = vld [vmem:[#allocation5 + $0x190] sm:$0xff]  ;;  %v1111_v0 = vld [vmem:[#allocation5 + $0x108] sm:$0xff] }
  0x22   :  { %631 = vmatpush.bf16.msra.mxu3 %v1105_v19  ;;  %v1137_v59 = vld [vmem:[#allocation5 + $0x1d8] sm:$0xff]  ;;  %v1136_v63 = vld [vmem:[#allocation5 + $0x1d0] sm:$0xff]  ;;  %v1119_v1 = vld [vmem:[#allocation5 + $0x148] sm:$0xff] }
  0x23   :  { %593 = vmatpush.bf16.msra.mxu0 %v1080_v20  ;;  %v1127_v2 = vld [vmem:[#allocation5 + $0x188] sm:$0xff]  ;;  %v1110_v4 = vld [vmem:[#allocation5 + $0x100] sm:$0xff]  ;;  %v66_v10 = vld [vmem:[#allocation2 + $0x30] sm:$0xff] }
  0x24   :  { %606 = vmatpush.bf16.msra.mxu1 %v1088_v21  ;;  %v1135_v3 = vld [vmem:[#allocation5 + $0x1c8] sm:$0xff]  ;;  %v1118_v5 = vld [vmem:[#allocation5 + $0x140] sm:$0xff]  ;;  %v67_v11 = vld [vmem:[#allocation2 + $0x38] sm:$0xff]  ;;  %v74_v14 = vpack.c.bf16 %v66_v10, %v66_v10 }
  0x25   :  { %619 = vmatpush.bf16.msra.mxu2 %v1096_v22  ;;  %v1126_v6 = vld [vmem:[#allocation5 + $0x180] sm:$0xff]  ;;  %v65_v8 = vld [vmem:[#allocation2 + $0x28] sm:$0xff]  ;;  %v75_v15 = vpack.c.bf16 %v67_v11, %v67_v11  ;;  %v1149_v16 = vld [vmem:[#allocation7 + $0x38] sm:$0xff] }
  0x26   :  { %632 = vmatpush.bf16.msra.mxu3 %v1104_v23  ;;  %v64_v7 = vld [vmem:[#allocation2 + $0x20] sm:$0xff]  ;;  %v73_v13 = vpack.c.bf16 %v65_v8, %v65_v8  ;;  %v1148_v17 = vld [vmem:[#allocation7 + $0x30] sm:$0xff]  ;;  %v1147_v18 = vld [vmem:[#allocation7 + $0x28] sm:$0xff] }
  0x27   :  { %594 = vmatpush.bf16.msra.mxu0 %v1079_v24  ;;  %v1134_v9 = vld [vmem:[#allocation5 + $0x1c0] sm:$0xff]  ;;  %v72_v12 = vpack.c.bf16 %v64_v7, %v64_v7  ;;  %v1145_v20 = vld [vmem:[#allocation7 + $0x18] sm:$0xff]  ;;  %v1144_v22 = vld [vmem:[#allocation7 + $0x10] sm:$0xff] }
  0x28   :  { %607 = vmatpush.bf16.msra.mxu1 %v1087_v25  ;;  %v1146_v19 = vld [vmem:[#allocation7 + $0x20] sm:$0xff]  ;;  %v1143_v24 = vld [vmem:[#allocation7 + $0x8] sm:$0xff] }
  0x29   :  { %620 = vmatpush.bf16.msra.mxu2 %v1095_v26 }
  0x2a   :  { %633 = vmatpush.bf16.msra.mxu3 %v1103_v27 }
  0x2b   :  { %595 = vmatpush.bf16.msra.mxu0 %v1078_v28  ;;  %v1142_v28 = vld [vmem:[#allocation7] sm:$0xff] }
  0x2c   :  { %608 = vmatpush.bf16.msra.mxu1 %v1086_v29 }
  0x2d   :  { %621 = vmatpush.bf16.msra.mxu2 %v1094_v30 }
  0x2e   :  { %634 = vmatpush.bf16.msra.mxu3 %v1102_v31  ;;  %596 = vmatmul.bf16.vlgmr.msra.gmra.mxu0 %v68_v41 }
  0x2f   :  { %640 = vmatpush.bf16.msrb.mxu0 %v1117_v32  ;;  %609 = vmatmul.bf16.vlgmr.msra.gmra.mxu1 %v69_v43 }
  0x30   :  { %653 = vmatpush.bf16.msrb.mxu1 %v1125_v35  ;;  %622 = vmatmul.bf16.vlgmr.msra.gmra.mxu2 %v70_v40 }
  0x31   :  { %666 = vmatpush.bf16.msrb.mxu2 %v1133_v38  ;;  %635 = vmatmul.bf16.vlgmr.msra.gmra.mxu3 %v71_v42 }
  0x32   :  { %679 = vmatpush.bf16.msrb.mxu3 %v1141_v39 }
  0x33   :  { %641 = vmatpush.bf16.msrb.mxu0 %v1116_v44 }
  0x34   :  { %654 = vmatpush.bf16.msrb.mxu1 %v1124_v45 }
  0x35   :  { %667 = vmatpush.bf16.msrb.mxu2 %v1132_v46 }
  0x36   :  { %680 = vmatpush.bf16.msrb.mxu3 %v1140_v47 }
  0x37   :  { %642 = vmatpush.bf16.msrb.mxu0 %v1115_v48 }
  0x38   :  { %655 = vmatpush.bf16.msrb.mxu1 %v1123_v49 }
  0x39   :  { %668 = vmatpush.bf16.msrb.mxu2 %v1131_v50 }
  0x3a   :  { %681 = vmatpush.bf16.msrb.mxu3 %v1139_v51 }
  0x3b   :  { %643 = vmatpush.bf16.msrb.mxu0 %v1114_v52 }
  0x3c   :  { %656 = vmatpush.bf16.msrb.mxu1 %v1122_v53 }
  0x3d   :  { %669 = vmatpush.bf16.msrb.mxu2 %v1130_v54 }
  0x3e   :  { %682 = vmatpush.bf16.msrb.mxu3 %v1138_v55 }
  0x3f   :  { %644 = vmatpush.bf16.msrb.mxu0 %v1113_v56 }
  0x40   :  { %657 = vmatpush.bf16.msrb.mxu1 %v1121_v57 }
  0x41   :  { %670 = vmatpush.bf16.msrb.mxu2 %v1129_v58 }
  0x42   :  { %683 = vmatpush.bf16.msrb.mxu3 %v1137_v59 }
  0x43   :  { %645 = vmatpush.bf16.msrb.mxu0 %v1112_v60 }
  0x44   :  { %658 = vmatpush.bf16.msrb.mxu1 %v1120_v61 }
  0x45   :  { %671 = vmatpush.bf16.msrb.mxu2 %v1128_v62 }
  0x46   :  { %684 = vmatpush.bf16.msrb.mxu3 %v1136_v63 }
  0x47   :  { %646 = vmatpush.bf16.msrb.mxu0 %v1111_v0 }
  0x48   :  { %659 = vmatpush.bf16.msrb.mxu1 %v1119_v1 }
  0x49   :  { %672 = vmatpush.bf16.msrb.mxu2 %v1127_v2 }
  0x4a   :  { %685 = vmatpush.bf16.msrb.mxu3 %v1135_v3 }
  0x4b   :  { %647 = vmatpush.bf16.msrb.mxu0 %v1110_v4 }
  0x4c   :  { %660 = vmatpush.bf16.msrb.mxu1 %v1118_v5 }
  0x4d   :  { %673 = vmatpush.bf16.msrb.mxu2 %v1126_v6 }
  0x4e   :  { %686 = vmatpush.bf16.msrb.mxu3 %v1134_v9  ;;  %648 = vmatmul.bf16.vlgmr.msrb.gmra.mxu0 %v72_v12 }
  0x4f   :  { %661 = vmatmul.bf16.vlgmr.msrb.gmra.mxu1 %v73_v13  ;;  %758 = vmatpush.bf16.msra.mxu0 %v1149_v16 }
  0x50   :  { %674 = vmatmul.bf16.vlgmr.msrb.gmra.mxu2 %v74_v14 }
  0x51   :  { %687 = vmatmul.bf16.vlgmr.msrb.gmra.mxu3 %v75_v15 }
  0x53   :  { %759 = vmatpush.bf16.msra.mxu0 %v1148_v17 }
  0x57   :  { %760 = vmatpush.bf16.msra.mxu0 %v1147_v18 }
  0x5b   :  { %761 = vmatpush.bf16.msra.mxu0 %v1146_v19 }
  0x5f   :  { %762 = vmatpush.bf16.msra.mxu0 %v1145_v20 }
  0x63   :  { %763 = vmatpush.bf16.msra.mxu0 %v1144_v22 }
  0x67   :  { %764 = vmatpush.bf16.msra.mxu0 %v1143_v24 }
  0x6b   :  { %765 = vmatpush.bf16.msra.mxu0 %v1142_v28 }
  0xab   :  { %v597_v21 = vpop.f32.mrf.mxu0 }
  0xac   :  { %v610_v23 = vpop.f32.mrf.mxu1 }
  0xad   :  { %v611_v32 = vadd.f32 %v610_v23, %v597_v21 }
  0xb3   :  { %v623_v25 = vpop.f32.mrf.mxu2  ;;  %v599_v27 = vpop.f32.mrf.mxu0 }
  0xb4   :  { %v636_v26 = vpop.f32.mrf.mxu3  ;;  %v612_v29 = vpop.f32.mrf.mxu1  ;;  %v624_v33 = vadd.f32 %v623_v25, %v611_v32 }
  0xb6   :  { %v637_v34 = vadd.f32 %v636_v26, %v624_v33 }
  0xbb   :  { %v625_v30 = vpop.f32.mrf.mxu2 }
  0xbc   :  { %v638_v31 = vpop.f32.mrf.mxu3 }
  0xcb   :  { %v649_v35 = vpop.f32.mrf.mxu0 }
  0xcc   :  { %v662_v36 = vpop.f32.mrf.mxu1  ;;  %v650_v37 = vadd.f32 %v649_v35, %v637_v34 }
  0xce   :  { %v663_v38 = vadd.f32 %v662_v36, %v650_v37 }
  0xd3   :  { %v675_v39 = vpop.f32.mrf.mxu2  ;;  %v651_v42 = vpop.f32.mrf.mxu0 }
  0xd4   :  { %v688_v40 = vpop.f32.mrf.mxu3  ;;  %v676_v41 = vadd.f32 %v675_v39, %v663_v38  ;;  %v664_v43 = vpop.f32.mrf.mxu1 }
  0xd6   :  { %v689_v44 = vadd.f32 %v688_v40, %v676_v41 }
  0xd8   :  { %v692_v45 = vmax.f32 %v689_v44, 0.0 }
  0xda   :  { %v693_v46 = vpack.c.bf16 %v692_v45, %v692_v45 }
  0xdb   :  { %v677_v47 = vpop.f32.mrf.mxu2 }
  0xdc   :  { %v690_v48 = vpop.f32.mrf.mxu3  ;;  %766 = vmatmul.bf16.vlgmr.msra.gmra.mxu0 %v693_v46 }
 0x159   :  { %v767_v49 = vpop.f32.mrf.mxu0 }
 0x15a   :  { %771 = vst [vmem:[#allocation8] sm:$0xff] %v767_v49 }
 0x15b   :  { %782 = dma.vmem_to_hbm [thread:$0]  %s778_s2, 128, %s780_s30, [#allocation4]  }
 0x161   :  { %v769_v50 = vpop.f32.mrf.mxu0 }
 0x162   :  { %1256 = dma.done.wait [#allocation4], 128  }
 0x163   :  { %1257 = vsyncadd [#allocation4], 4294967168 }
 0x164   :  { %787 = vsyncpa [#allocation3], 1 }
 0x165   :  { %788 = vsyncpa [#allocation6], 1 }
 0x166   :  { %789 = vsyncpa [#allocation4], 1 }

</bundles_post_ra>
